<compile_context>
chip_gen: v6e
topology: v6e:2x2x1
jax: 0.10.0
libtpu: 0.0.40
codegen_flags: <defaults>
</compile_context>

<pallas_src>
import jax
import jax.numpy as jnp
from jax.experimental import pallas as pl
from jax.experimental.pallas import tpu as pltpu


def _film_kernel(x_ref, gamma_ref, beta_ref, o_ref):
    # x_ref:     (TR, TS)   row tile (flattened batch*channel) x spatial tile
    # gamma_ref: (TR, 1)    per-row scale, broadcast across lanes (spatial)
    # beta_ref:  (TR, 1)    per-row shift
    x = x_ref[...]
    g = gamma_ref[...]
    b = beta_ref[...]
    o_ref[...] = (g * x + b).astype(o_ref.dtype)


_LANE = 128
_SUBLANE = 8
_BLOCK_BUDGET_BYTES = 2 << 20  # ~2 MiB per x block; x/out double-buffered ≈ 8 MiB


def _pick_tiles(R: int, S: int, itemsize: int) -> tuple[int, int]:
    """Pick (TR, TS): lane tile on S (128-aligned or full), sublane tile on R
    (8-aligned or full), sized to fill ~_BLOCK_BUDGET_BYTES per block."""
    # Lane (last) axis.
    max_ts = max(_BLOCK_BUDGET_BYTES // itemsize, _LANE)
    if S <= max_ts:
        ts = S  # full dim is always a legal block dim
    else:
        ts = (max_ts // _LANE) * _LANE
    # Sublane (second-to-last) axis: fill the remaining budget.
    row_bytes = max(ts * itemsize, 1)
    max_tr = max(_BLOCK_BUDGET_BYTES // row_bytes, 1)
    if R <= max_tr:
        tr = R
    else:
        tr = max((max_tr // _SUBLANE) * _SUBLANE, _SUBLANE)
    return tr, ts


def film(x: jax.Array, gamma: jax.Array, beta: jax.Array) -> jax.Array:
    """FiLM forward. x: (B, C, *spatial), gamma/beta: (B, C)."""
    orig_shape = x.shape
    B, C = x.shape[0], x.shape[1]
    spatial = x.shape[2:]
    S = 1
    for d in spatial:
        S *= d
    R = B * C

    out_dtype = jnp.result_type(x.dtype, gamma.dtype, beta.dtype)

    # Genuinely empty input: output has the same (empty) shape; nothing to do.
    if x.size == 0:
        return jnp.zeros(orig_shape, dtype=out_dtype)

    # Flatten: batch*channel on the sublane axis, spatial on the lane axis.
    x2 = x.reshape(R, S)
    g2 = gamma.reshape(R, 1)
    b2 = beta.reshape(R, 1)

    TR, TS = _pick_tiles(R, S, jnp.dtype(x.dtype).itemsize)
    grid = (pl.cdiv(R, TR), pl.cdiv(S, TS))

    x_itemsize = jnp.dtype(x.dtype).itemsize
    o_itemsize = jnp.dtype(out_dtype).itemsize
    p_itemsize = jnp.dtype(gamma.dtype).itemsize
    cost = pl.CostEstimate(
        flops=2 * R * S,
        transcendentals=0,
        bytes_accessed=R * S * (x_itemsize + o_itemsize) + 2 * R * p_itemsize,
    )

    out2 = pl.pallas_call(
        _film_kernel,
        out_shape=jax.ShapeDtypeStruct((R, S), out_dtype),
        grid_spec=pl.GridSpec(
            grid=grid,
            in_specs=[
                pl.BlockSpec((TR, TS), lambda r, s: (r, s)),
                pl.BlockSpec((TR, 1), lambda r, s: (r, 0)),
                pl.BlockSpec((TR, 1), lambda r, s: (r, 0)),
            ],
            out_specs=pl.BlockSpec((TR, TS), lambda r, s: (r, s)),
        ),
        compiler_params=pltpu.CompilerParams(
            dimension_semantics=("parallel", "parallel"),
        ),
        cost_estimate=cost,
    )(x2, g2, b2)

    return out2.reshape(orig_shape)


if __name__ == "__main__":
    key = jax.random.PRNGKey(0)
    kx, kg, kb, kx2, kg2, kb2 = jax.random.split(key, 6)

    # Primary test: 4-D NCHW input, small shapes.
    B, C, H, W = 2, 4, 16, 16
    x = jax.random.normal(kx, (B, C, H, W), dtype=jnp.float32)
    gamma = jax.random.normal(kg, (B, C), dtype=jnp.float32)
    beta = jax.random.normal(kb, (B, C), dtype=jnp.float32)

    out = film(x, gamma, beta)
    out = jax.block_until_ready(out)

    ref = gamma[:, :, None, None] * x + beta[:, :, None, None]
    assert out.shape == x.shape
    assert jnp.allclose(out, ref, atol=1e-6, rtol=1e-6)

    # Secondary test: 3-D input (B, C, T) exercising a different rank.
    B2, C2, T2 = 2, 4, 8
    x2 = jax.random.normal(kx2, (B2, C2, T2), dtype=jnp.float32)
    gamma2 = jax.random.normal(kg2, (B2, C2), dtype=jnp.float32)
    beta2 = jax.random.normal(kb2, (B2, C2), dtype=jnp.float32)

    out2 = film(x2, gamma2, beta2)
    out2 = jax.block_until_ready(out2)

    ref2 = gamma2[:, :, None] * x2 + beta2[:, :, None]
    assert out2.shape == x2.shape
    assert jnp.allclose(out2, ref2, atol=1e-6, rtol=1e-6)

    print("KERNEL_OK")
</pallas_src>

<mosaic_0001>
module attributes {stable_mosaic.version = 11 : i64} {
  func.func @_film_kernel(%arg0: i32, %arg1: i32, %arg2: memref<8x256xf32, #tpu.memory_space<vmem>>, %arg3: memref<8x1xf32, #tpu.memory_space<vmem>>, %arg4: memref<8x1xf32, #tpu.memory_space<vmem>>, %arg5: memref<8x256xf32, #tpu.memory_space<vmem>>) attributes {dimension_semantics = [#tpu.dimension_semantics<parallel>, #tpu.dimension_semantics<parallel>], iteration_bounds = array<i64: 1, 1>, scalar_prefetch = 0 : i64, scratch_operands = 0 : i64, tpu.core_type = #tpu.core_type<tc>, window_params = [{transform_indices = @transform_0, window_bounds = array<i64: 8, 256>}, {transform_indices = @transform_1, window_bounds = array<i64: 8, 1>}, {transform_indices = @transform_2, window_bounds = array<i64: 8, 1>}, {transform_indices = @transform_3, window_bounds = array<i64: 8, 256>}]} {
    %c0 = arith.constant 0 : index
    %c0_0 = arith.constant 0 : index
    %0 = vector.load %arg2[%c0, %c0_0] : memref<8x256xf32, #tpu.memory_space<vmem>>, vector<8x256xf32>
    %c0_1 = arith.constant 0 : index
    %c0_2 = arith.constant 0 : index
    %1 = vector.load %arg3[%c0_1, %c0_2] : memref<8x1xf32, #tpu.memory_space<vmem>>, vector<8x1xf32>
    %c0_3 = arith.constant 0 : index
    %c0_4 = arith.constant 0 : index
    %2 = vector.load %arg4[%c0_3, %c0_4] : memref<8x1xf32, #tpu.memory_space<vmem>>, vector<8x1xf32>
    %3 = vector.broadcast %1 : vector<8x1xf32> to vector<8x256xf32>
    %4 = arith.mulf %3, %0 : vector<8x256xf32>
    %5 = vector.broadcast %2 : vector<8x1xf32> to vector<8x256xf32>
    %6 = arith.addf %4, %5 : vector<8x256xf32>
    %c0_5 = arith.constant 0 : index
    %c0_6 = arith.constant 0 : index
    %7 = vector.load %arg5[%c0_5, %c0_6] : memref<8x256xf32, #tpu.memory_space<vmem>>, vector<8x256xf32>
    tpu.vector_store %arg5[%c0_5, %c0_6], %6 {strides = array<i32>} : memref<8x256xf32, #tpu.memory_space<vmem>>, vector<8x256xf32>,
    return
  }
  func.func @transform_0(%arg0: i32, %arg1: i32) -> (i32, i32) {
    %c0_i32 = arith.constant 0 : i32
    return %arg0, %arg1 : i32, i32
  }
  func.func @transform_1(%arg0: i32, %arg1: i32) -> (i32, i32) {
    %c0_i32 = arith.constant 0 : i32
    %c0_i32_0 = arith.constant 0 : i32
    return %arg0, %c0_i32 : i32, i32
  }
  func.func @transform_2(%arg0: i32, %arg1: i32) -> (i32, i32) {
    %c0_i32 = arith.constant 0 : i32
    %c0_i32_0 = arith.constant 0 : i32
    return %arg0, %c0_i32 : i32, i32
  }
  func.func @transform_3(%arg0: i32, %arg1: i32) -> (i32, i32) {
    %c0_i32 = arith.constant 0 : i32
    return %arg0, %arg1 : i32, i32
  }
}

</mosaic_0001>

<bundles_post_ra>
// kernel: tpu_custom_call.1
= control target key start
LH: loop header
LB: loop body
LE: loop exit
PB: predicated region body
PF: predicated region fallthrough
CT: control target
= control target key end

     0   :  { %v74_v1 = vmov 0   ;;  %s111_s0 = inlined_call_operand.vmem [shape: f32[8,256], index: 0, kind: input, shape index: {}]   ;;  %s112_s1 = inlined_call_operand.vmem [shape: f32[8,1], index: 1, kind: input, shape index: {}]   ;;  %s113_s2 = inlined_call_operand.vmem [shape: f32[8,1], index: 2, kind: input, shape index: {}]   ;;  %s114_s3 = inlined_call_operand.hbm [shape: f32[8,256], index: 3, kind: output, shape index: {}]  }
   0x1   :  { %v17_v0 = vld [vmem:[%s112_s1] sm:$0xff]  ;;  %51 = vset.pattern.permute.xlu0 %v74_v1 }
   0x2   :  { %8 = vsyncpa [#allocation3], 0  ;;  %21 = vperm.xlu0 %51, %v17_v0   ;;  %v18_v2 = vld [vmem:[%s113_s2] sm:$0xff]  ;;  %v16_v5 = vld [vmem:[%s111_s0 + $0x8] sm:$0xff]  ;;  %s75_s20 = smov [#allocation2]  }
   0x3   :  { %v15_v4 = vld [vmem:[%s111_s0] sm:$0xff]  ;;  %s41_s1 = sshll.u32 %s75_s20, 4  ;;  %s42_s1 = int_to_ptr.vmem [resolvable:$true] %s41_s1 }
   0x4   :  { %s52_s2 = scalar_lea.vmem %s42_s1, 256  ;;  %p57_p1 = scmp.lt.s32.totalorder %s42_s1, %s42_s1 }
   0x5   :  { %p53_p0 = scmp.ne.s32.totalorder %s42_s1, %s52_s2  ;;  %p58_p2 = scmp.lt.s32.totalorder %s52_s2, %s52_s2 }
   0x6   :  { %28 = vperm.xlu0 %51, %v18_v2  }
   0x7   :  { %p59_p3 = por %p58_p2, %p57_p1 }
   0x9   :  { %p60_p4 = pnand %p59_p3, %p53_p0 }
  0x7d   :  { %v22_v3 = vpop.permute.xlu0 %21 }
  0x7e   :  { %v24_v6 = vmul.f32 %v22_v3, %v15_v4  ;;  %v25_v7 = vmul.f32 %v22_v3, %v16_v5 }
  0x81   :  { %v29_v8 = vpop.permute.xlu0 %28 }
  0x82   :  { %v31_v9 = vadd.f32 %v29_v8, %v24_v6  ;;  %v32_v10 = vadd.f32 %v29_v8, %v25_v7 }
  0x84   :  { %33 = vst [vmem:[#allocation2] sm:$0xff] %v31_v9  ;;  %34 = vst [vmem:[#allocation2 + $0x8] sm:$0xff] %v32_v10 }
  0x85   :  { %63 = shalt.err (!%p60_p4)
}
  0x86   :  { %44 = dma.vmem_to_hbm [thread:$0]  %s42_s1, 256, %s114_s3, [#allocation3]  }
  0x87   :  { %72 = dma.done.wait [#allocation3], 256  }
  0x88   :  { %73 = vsyncadd [#allocation3], 4294967040 }
  0x89   :  { %48 = vsyncpa [#allocation3], 1 }

</bundles_post_ra>
